<compile_context>
chip_gen: v5e
topology: v5e:2x2
jax: 0.10.0
libtpu: 0.0.40
codegen_flags: <defaults>
</compile_context>

<pallas_src>
import math

import jax
import jax.numpy as jnp
from jax.experimental import pallas as pl
from jax.experimental.pallas import tpu as pltpu

CPAD = 128        # channel padding granularity (lane width)


def _round_up(a, b):
    return (a + b - 1) // b * b


# ----------------------- fused 1x1-conv matmul kernel -----------------------
def _make_mm_kernel(relu: bool, has_res: bool):
    def kernel(x_ref, w_ref, sh_ref, *rest):
        if has_res:
            r_ref, o_ref, acc_ref = rest
        else:
            (o_ref, acc_ref) = rest
            r_ref = None

        @pl.when(pl.program_id(2) == 0)
        def _():
            acc_ref[...] = jnp.zeros_like(acc_ref)

        acc_ref[...] += jnp.dot(x_ref[...], w_ref[...],
                                preferred_element_type=jnp.float32)

        @pl.when(pl.program_id(2) == pl.num_programs(2) - 1)
        def _():
            y = acc_ref[...] + sh_ref[...]
            if r_ref is not None:
                y = y + r_ref[...].astype(jnp.float32)   # residual kept in f32
            if relu:
                y = jnp.maximum(y, 0.0)
            o_ref[...] = y.astype(o_ref.dtype)

    return kernel


def fused_matmul_bn(x2d, w, shift, residual=None, relu=False,
                    out_dtype=jnp.bfloat16):
    """bf16 (M,K) @ (K,N) with f32 accumulation, +shift (+residual) (+ReLU).

    BN scale is assumed pre-folded into `w`.
    """
    M, K = x2d.shape
    N = w.shape[1]

    # Large tiles for memory-bound small-K layers; M rounded to 128 rows
    # (bf16 sublane packing), never to a ragged multiple of 8.
    cap_m = 1024 if K <= 256 else 512
    tm = min(cap_m, _round_up(M, 128))
    Mp = _round_up(M, tm)
    if Mp != M:
        x2d = jnp.pad(x2d, ((0, Mp - M), (0, 0)))
        if residual is not None:
            residual = jnp.pad(residual, ((0, Mp - M), (0, 0)))

    if K % 128 == 0:
        # no 384: v6e/v7x MXUs are 256 deep -> keep K tiles at 512/256/128
        tk = next(t for t in (512, 256, 128) if K % t == 0)
    else:
        tk = K                       # tiny K (conv_input): single full block
    if N % 128 == 0:
        tn = next(t for t in (512, 256, 128) if N % t == 0)
    else:
        tn = N

    sh2 = shift.reshape(1, N).astype(jnp.float32)

    in_specs = [
        pl.BlockSpec((tm, tk), lambda i, j, k: (i, k)),    # activations
        pl.BlockSpec((tk, tn), lambda i, j, k: (k, j)),    # weights (scale folded)
        pl.BlockSpec((1, tn), lambda i, j, k: (0, j)),     # BN shift
    ]
    args = [x2d.astype(jnp.bfloat16), w.astype(jnp.bfloat16), sh2]
    if residual is not None:
        in_specs.append(pl.BlockSpec((tm, tn), lambda i, j, k: (i, j)))
        args.append(residual)                              # native dtype (f32 ok)

    out = pl.pallas_call(
        _make_mm_kernel(relu, residual is not None),
        out_shape=jax.ShapeDtypeStruct((Mp, N), out_dtype),
        grid=(Mp // tm, N // tn, K // tk),
        in_specs=in_specs,
        out_specs=pl.BlockSpec((tm, tn), lambda i, j, k: (i, j)),
        scratch_shapes=[pltpu.VMEM((tm, tn), jnp.float32)],
        compiler_params=pltpu.CompilerParams(
            dimension_semantics=("parallel", "parallel", "arbitrary")),
    )(*args)
    return out[:M] if Mp != M else out


def conv1x1(x, w, shift, stride=1, relu=False, residual=None,
            out_dtype=jnp.bfloat16):
    """1x1 conv (no bias) + folded-BN shift (+residual, +ReLU). x: NHWC."""
    if stride != 1:
        # TODO(synk): fold this subsample into the matmul BlockSpec/index_map.
        x = x[:, ::stride, ::stride, :]
    n, h, wd, c = x.shape
    x2d = x.reshape(n * h * wd, c)
    r2d = None if residual is None else residual.reshape(n * h * wd, -1)
    y = fused_matmul_bn(x2d, w, shift, residual=r2d, relu=relu,
                        out_dtype=out_dtype)
    return y.reshape(n, h, wd, w.shape[1])


# -------------------------- in-kernel 3x3 conv -------------------------------
def _make_conv3x3_kernel(ho, wk, wpp, stride, relu: bool):
    """ho: output rows; wk: kernel-side output cols (wo or 2*wo); wpp: padded
    input width (multiple of 8 so all reshapes are layout-preserving)."""
    M = ho * wpp

    def kernel(x_ref, w_ref, sh_ref, o_ref, acc_ref):
        cin = x_ref.shape[-1]
        for dy in range(3):                                   # 3 tap rows
            if stride == 1:
                rows = x_ref[0, pl.ds(dy, ho), :, :]          # (ho, wpp, cin)
            else:
                # stride-2 H subsample via layout-preserving band reshape
                band = x_ref[0, pl.ds(dy, 2 * ho), :, :]      # (2ho, wpp, cin)
                rows = band.reshape(ho, 2, wpp, cin)[:, 0]    # rows dy, dy+2, ...
            rows2d = rows.reshape(M, cin)                     # wpp % 8 == 0 -> free
            part = None
            for dx in range(3):                               # chain taps in regs
                p = jnp.dot(rows2d, w_ref[3 * dy + dx],
                            preferred_element_type=jnp.float32)   # (M, tn)
                if dx:
                    # out col w needs input col w+dx -> shift left by dx (XLU)
                    p = pltpu.roll(p, shift=M - dx, axis=0)
                part = p if part is None else part + p
            part = part.reshape(ho, wpp, part.shape[-1])
            if dy == 0:                                       # 1 store + 2 RMW
                acc_ref[...] = part
            else:
                acc_ref[...] += part
        y = acc_ref[:, pl.ds(0, wk), :]                       # contiguous crop
        y = y.reshape(ho * wk, y.shape[-1]) + sh_ref[...]
        if relu:
            y = jnp.maximum(y, 0.0)
        o_ref[...] = y.reshape(1, ho * wk, y.shape[-1]).astype(o_ref.dtype)

    return kernel


def conv3x3(x, w9, shift, stride, relu=True):
    """3x3 conv, padding=1 (no bias) + folded-BN shift (+ReLU).

    x: (N,H,W,C) bf16 with C a multiple of 128.  w9: (9, C, Np) bf16,
    tap t = 3*dy + dx.  All 9 taps are accumulated inside one kernel; dx
    alignment uses pltpu.roll, dy rows are contiguous (or band-reshaped for
    stride 2) full-width slices -> no strided W windows, no per-tap relayouts.
    """
    n, h, wd, c = x.shape
    ho = (h - 1) // stride + 1
    wo = (wd - 1) // stride + 1
    wk = wo if stride == 1 else 2 * wo        # kernel-side width (pre-subsample)
    win = wd + 2
    wpp = _round_up(win, 8)                   # lane/sublane-friendly width
    hin = h + 2 if stride == 1 else 2 * ho + 2
    # 1-row/col halo + alignment padding; padded region stays zero.
    xp = jnp.pad(x, ((0, 0), (1, hin - h - 1), (1, wpp - wd - 1), (0, 0)))

    Np = w9.shape[2]
    if Np % 128 == 0:
        tn = 256 if Np % 256 == 0 else 128
    else:
        tn = Np

    out = pl.pallas_call(
        _make_conv3x3_kernel(ho, wk, wpp, stride, relu),
        out_shape=jax.ShapeDtypeStruct((n, ho * wk, Np), jnp.bfloat16),
        grid=(n, Np // tn),
        in_specs=[
            pl.BlockSpec((1, hin, wpp, c), lambda b, j: (b, 0, 0, 0)),
            pl.BlockSpec((9, c, tn), lambda b, j: (0, 0, j)),
            pl.BlockSpec((1, tn), lambda b, j: (0, j)),
        ],
        out_specs=pl.BlockSpec((1, ho * wk, tn), lambda b, j: (b, 0, j)),
        scratch_shapes=[pltpu.VMEM((ho, wpp, tn), jnp.float32)],
        compiler_params=pltpu.CompilerParams(
            dimension_semantics=("parallel", "parallel")),
    )(xp.astype(jnp.bfloat16), w9.astype(jnp.bfloat16),
      shift.reshape(1, Np).astype(jnp.float32))

    out = out.reshape(n, ho, wk, Np)
    if stride == 2:
        # TODO(synk): replace with an in-kernel `pl.ds(0, wo, stride=2)` crop.
        out = out[:, :, ::2, :]
    return out


# ------------------------------ parameters -----------------------------------
def init_params(key, in_channels, out_channels, times, scale=4):
    mid = out_channels * scale
    keys = iter(jax.random.split(key, 64))
    eps = 1e-5

    def conv_w(cin, cout, k=1):
        bound = 1.0 / math.sqrt(cin * k * k)
        if k == 1:
            return jax.random.uniform(next(keys), (cin, cout), jnp.float32, -bound, bound)
        return jax.random.uniform(next(keys), (k, k, cin, cout), jnp.float32, -bound, bound)

    def bn(c):
        gamma = jax.random.uniform(next(keys), (c,), jnp.float32, 0.5, 1.5)
        beta = 0.1 * jax.random.normal(next(keys), (c,), jnp.float32)
        mean = 0.1 * jax.random.normal(next(keys), (c,), jnp.float32)
        var = jax.random.uniform(next(keys), (c,), jnp.float32, 0.5, 1.5)
        s = gamma / jnp.sqrt(var + eps)
        return s, beta - mean * s

    P = {}
    P["conv_input"] = conv_w(in_channels, out_channels)
    P["skip"] = conv_w(out_channels, out_channels)
    P["norm_skip"] = bn(out_channels)
    P["conv1"] = conv_w(out_channels, mid)
    P["conv2_4d"] = conv_w(mid, mid, 3)                    # (3,3,Cin,Cout)
    P["conv3"] = conv_w(mid, out_channels)
    for t in range(times):
        P[f"norm1_{t}"] = bn(mid)
        P[f"norm2_{t}"] = bn(mid)
        P[f"norm3_{t}"] = bn(out_channels)
    return P


def prepare_kernel_params(P, in_channels, out_channels, times, scale=4):
    """Pad channels (to 128 / >=8 for the tiny first K), fold BN scale into
    weights, cast to bf16."""
    mid = out_channels * scale
    cop = _round_up(out_channels, CPAD)
    midp = _round_up(mid, CPAD)
    cinp = _round_up(in_channels, 8)          # align the tiny conv_input K

    def pad2(w, rp, cp):
        return jnp.pad(w, ((0, rp - w.shape[0]), (0, cp - w.shape[1])))

    def pad1(v, n):
        return jnp.pad(v, (0, n - v.shape[0]))

    KP = {}
    KP["conv_input_w"] = pad2(P["conv_input"], cinp, cop).astype(jnp.bfloat16)
    KP["conv_input_sh"] = jnp.zeros((cop,), jnp.float32)

    sc, sh = P["norm_skip"]
    KP["skip_w"] = (pad2(P["skip"], cop, cop) * pad1(sc, cop)[None, :]).astype(jnp.bfloat16)
    KP["skip_sh"] = pad1(sh, cop).astype(jnp.float32)

    w2_pad = jnp.pad(P["conv2_4d"],
                     ((0, 0), (0, 0), (0, midp - mid), (0, midp - mid)))
    for t in range(times):
        s1, b1 = P[f"norm1_{t}"]
        KP[f"conv1_w_{t}"] = (pad2(P["conv1"], cop, midp)
                              * pad1(s1, midp)[None, :]).astype(jnp.bfloat16)
        KP[f"conv1_sh_{t}"] = pad1(b1, midp).astype(jnp.float32)

        s2, b2 = P[f"norm2_{t}"]
        KP[f"conv2_w_{t}"] = (w2_pad * pad1(s2, midp)[None, None, None, :]) \
            .reshape(9, midp, midp).astype(jnp.bfloat16)
        KP[f"conv2_sh_{t}"] = pad1(b2, midp).astype(jnp.float32)

        s3, b3 = P[f"norm3_{t}"]
        KP[f"conv3_w_{t}"] = (pad2(P["conv3"], midp, cop)
                              * pad1(s3, cop)[None, :]).astype(jnp.bfloat16)
        KP[f"conv3_sh_{t}"] = pad1(b3, cop).astype(jnp.float32)
    return KP


# ------------------------------ forward pass ---------------------------------
def corblock_s_forward(inp_nchw, KP, times, out_channels):
    x = jnp.transpose(inp_nchw, (0, 2, 3, 1)).astype(jnp.bfloat16)  # NCHW -> NHWC
    cin_p = KP["conv_input_w"].shape[0]
    if x.shape[-1] != cin_p:                                        # K alignment
        x = jnp.pad(x, ((0, 0), (0, 0), (0, 0), (0, cin_p - x.shape[-1])))
    x = conv1x1(x, KP["conv_input_w"], KP["conv_input_sh"])         # no BN/ReLU
    for t in range(times):
        if t == 0:
            # keep the skip/residual in f32 so the residual add stays f32
            skip = conv1x1(x, KP["skip_w"], KP["skip_sh"], stride=2,
                           out_dtype=jnp.float32)
            s2 = 2
        else:
            skip = x
            s2 = 1
        x = conv1x1(x, KP[f"conv1_w_{t}"], KP[f"conv1_sh_{t}"], relu=True)
        x = conv3x3(x, KP[f"conv2_w_{t}"], KP[f"conv2_sh_{t}"], stride=s2, relu=True)
        x = conv1x1(x, KP[f"conv3_w_{t}"], KP[f"conv3_sh_{t}"],
                    residual=skip, relu=True)
    out = x[..., :out_channels]                                     # drop padded channels
    return jnp.transpose(out, (0, 3, 1, 2)).astype(jnp.float32)     # NHWC -> NCHW


# --------------------------- pure-JAX reference ------------------------------
def ref_forward(inp_nchw, P, times):
    def conv(x, w4, stride, pad):
        return jax.lax.conv_general_dilated(
            x, w4, (stride, stride), [(pad, pad), (pad, pad)],
            dimension_numbers=("NHWC", "HWIO", "NHWC"))

    def bn(x, p):
        sc, sh = p
        return x * sc + sh

    def w1(m):
        return m.reshape(1, 1, *m.shape)

    x = jnp.transpose(inp_nchw, (0, 2, 3, 1)).astype(jnp.float32)
    x = conv(x, w1(P["conv_input"]), 1, 0)
    for t in range(times):
        if t == 0:
            skip = bn(conv(x, w1(P["skip"]), 2, 0), P["norm_skip"])
            s2 = 2
        else:
            skip = x
            s2 = 1
        x = jax.nn.relu(bn(conv(x, w1(P["conv1"]), 1, 0), P[f"norm1_{t}"]))
        x = jax.nn.relu(bn(conv(x, P["conv2_4d"], s2, 1), P[f"norm2_{t}"]))
        x = jax.nn.relu(bn(conv(x, w1(P["conv3"]), 1, 0), P[f"norm3_{t}"]) + skip)
    return jnp.transpose(x, (0, 3, 1, 2))


if __name__ == "__main__":
    key = jax.random.PRNGKey(0)
    k_in, k_par = jax.random.split(key)

    B, Cin, Cout, H, TIMES = 2, 4, 8, 16, 2
    inp = jax.random.normal(k_in, (B, Cin, H, H), jnp.float32)   # NCHW like PyTorch
    params = init_params(k_par, Cin, Cout, TIMES)
    kparams = prepare_kernel_params(params, Cin, Cout, TIMES)

    # ---- tight f32 per-layer check on the first 1x1 conv (kernel vs lax) ----
    x_nhwc = jnp.transpose(inp, (0, 2, 3, 1))
    cin_p = kparams["conv_input_w"].shape[0]
    x_pad = jnp.pad(x_nhwc, ((0, 0), (0, 0), (0, 0), (0, cin_p - Cin))).astype(jnp.bfloat16)
    y0 = conv1x1(x_pad, kparams["conv_input_w"], kparams["conv_input_sh"])
    y0 = jax.block_until_ready(y0)[..., :Cout].astype(jnp.float32)
    r0 = jax.lax.conv_general_dilated(
        x_nhwc.astype(jnp.float32), params["conv_input"].reshape(1, 1, Cin, Cout),
        (1, 1), [(0, 0), (0, 0)], dimension_numbers=("NHWC", "HWIO", "NHWC"))
    err0 = float(jnp.max(jnp.abs(y0 - r0)))
    tol0 = 0.03 * max(1.0, float(jnp.max(jnp.abs(r0))))
    assert err0 < tol0, ("per-layer check failed", err0, tol0)

    # ------------------------------ full block -------------------------------
    fwd = jax.jit(corblock_s_forward, static_argnums=(2, 3))
    out = jax.block_until_ready(fwd(inp, kparams, TIMES, Cout))
    ref = jax.block_until_ready(ref_forward(inp, params, TIMES))

    assert out.shape == (B, Cout, H // 2, H // 2), out.shape
    err = float(jnp.max(jnp.abs(out - ref)))
    tol = 0.08 * max(1.0, float(jnp.max(jnp.abs(ref))))   # bf16 operands, f32 accum
    assert err < tol, (err, tol)
    print("KERNEL_OK")
</pallas_src>

<mosaic_0001>
module attributes {stable_mosaic.version = 11 : i64} {
  func.func @kernel(%arg0: i32, %arg1: i32, %arg2: i32, %arg3: memref<512x8xbf16, #tpu.memory_space<vmem>>, %arg4: memref<8x128xbf16, #tpu.memory_space<vmem>>, %arg5: memref<1x128xf32, #tpu.memory_space<vmem>>, %arg6: memref<512x128xbf16, #tpu.memory_space<vmem>>, %arg7: memref<512x128xf32, #tpu.memory_space<vmem>>) attributes {dimension_semantics = [#tpu.dimension_semantics<parallel>, #tpu.dimension_semantics<parallel>, #tpu.dimension_semantics<arbitrary>], iteration_bounds = array<i64: 1, 1, 1>, scalar_prefetch = 0 : i64, scratch_operands = 1 : i64, tpu.core_type = #tpu.core_type<tc>, window_params = [{transform_indices = @transform_0, window_bounds = array<i64: 512, 8>}, {transform_indices = @transform_1, window_bounds = array<i64: 8, 128>}, {transform_indices = @transform_2, window_bounds = array<i64: 1, 128>}, {transform_indices = @transform_3, window_bounds = array<i64: 512, 128>}]} {
    %c0_i32 = arith.constant 0 : i32
    %0 = arith.cmpi eq, %arg2, %c0_i32 : i32
    %1 = arith.extui %0 : i1 to i32
    %c0_i32_0 = arith.constant 0 : i32
    %2 = arith.cmpi ne, %1, %c0_i32_0 : i32
    scf.if %2 {
      %cst_10 = arith.constant 0.000000e+00 : f32
      %12 = vector.broadcast %cst_10 : f32 to vector<512x128xf32>
      %c0_11 = arith.constant 0 : index
      %c0_12 = arith.constant 0 : index
      %13 = vector.load %arg7[%c0_11, %c0_12] : memref<512x128xf32, #tpu.memory_space<vmem>>, vector<512x128xf32>
      tpu.vector_store %arg7[%c0_11, %c0_12], %12 {strides = array<i32>} : memref<512x128xf32, #tpu.memory_space<vmem>>, vector<512x128xf32>,
    } else {
    }
    %c0 = arith.constant 0 : index
    %c0_1 = arith.constant 0 : index
    %3 = vector.load %arg7[%c0, %c0_1] : memref<512x128xf32, #tpu.memory_space<vmem>>, vector<512x128xf32>
    %c0_2 = arith.constant 0 : index
    %c0_3 = arith.constant 0 : index
    %4 = vector.load %arg3[%c0_2, %c0_3] : memref<512x8xbf16, #tpu.memory_space<vmem>>, vector<512x8xbf16>
    %c0_4 = arith.constant 0 : index
    %c0_5 = arith.constant 0 : index
    %5 = vector.load %arg4[%c0_4, %c0_5] : memref<8x128xbf16, #tpu.memory_space<vmem>>, vector<8x128xbf16>
    %cst = arith.constant dense<0.000000e+00> : vector<512x128xf32>
    %6 = tpu.matmul %4, %5, %cst {dimension_numbers = #tpu.dot_dimension_numbers<[1], [0], [0], [1], [0, 0, 1, 1], [], []>} : vector<512x8xbf16>, vector<8x128xbf16>, vector<512x128xf32> -> vector<512x128xf32>
    %7 = arith.addf %3, %6 : vector<512x128xf32>
    %c0_6 = arith.constant 0 : index
    %c0_7 = arith.constant 0 : index
    %8 = vector.load %arg7[%c0_6, %c0_7] : memref<512x128xf32, #tpu.memory_space<vmem>>, vector<512x128xf32>
    tpu.vector_store %arg7[%c0_6, %c0_7], %7 {strides = array<i32>} : memref<512x128xf32, #tpu.memory_space<vmem>>, vector<512x128xf32>,
    %c0_i32_8 = arith.constant 0 : i32
    %9 = arith.cmpi eq, %arg2, %c0_i32_8 : i32
    %10 = arith.extui %9 : i1 to i32
    %c0_i32_9 = arith.constant 0 : i32
    %11 = arith.cmpi ne, %10, %c0_i32_9 : i32
    scf.if %11 {
      %c0_10 = arith.constant 0 : index
      %c0_11 = arith.constant 0 : index
      %12 = vector.load %arg7[%c0_10, %c0_11] : memref<512x128xf32, #tpu.memory_space<vmem>>, vector<512x128xf32>
      %c0_12 = arith.constant 0 : index
      %c0_13 = arith.constant 0 : index
      %13 = vector.load %arg5[%c0_12, %c0_13] : memref<1x128xf32, #tpu.memory_space<vmem>>, vector<1x128xf32>
      %14 = vector.broadcast %13 : vector<1x128xf32> to vector<512x128xf32>
      %15 = arith.addf %12, %14 : vector<512x128xf32>
      %16 = arith.truncf %15 : vector<512x128xf32> to vector<512x128xbf16>
      %c0_14 = arith.constant 0 : index
      %c0_15 = arith.constant 0 : index
      %17 = vector.load %arg6[%c0_14, %c0_15] : memref<512x128xbf16, #tpu.memory_space<vmem>>, vector<512x128xbf16>
      tpu.vector_store %arg6[%c0_14, %c0_15], %16 {strides = array<i32>} : memref<512x128xbf16, #tpu.memory_space<vmem>>, vector<512x128xbf16>,
    } else {
    }
    return
  }
  func.func @transform_0(%arg0: i32, %arg1: i32, %arg2: i32) -> (i32, i32) {
    %c0_i32 = arith.constant 0 : i32
    return %arg0, %arg2 : i32, i32
  }
  func.func @transform_1(%arg0: i32, %arg1: i32, %arg2: i32) -> (i32, i32) {
    %c0_i32 = arith.constant 0 : i32
    return %arg2, %arg1 : i32, i32
  }
  func.func @transform_2(%arg0: i32, %arg1: i32, %arg2: i32) -> (i32, i32) {
    %c0_i32 = arith.constant 0 : i32
    %c0_i32_0 = arith.constant 0 : i32
    return %c0_i32, %arg1 : i32, i32
  }
  func.func @transform_3(%arg0: i32, %arg1: i32, %arg2: i32) -> (i32, i32) {
    %c0_i32 = arith.constant 0 : i32
    return %arg0, %arg1 : i32, i32
  }
}

</mosaic_0001>

<bundles_post_ra>
// kernel: tpu_custom_call.1
= control target key start
LH: loop header
LB: loop body
LE: loop exit
PB: predicated region body
PF: predicated region fallthrough
CT: control target
= control target key end

     0   :  { %vm470_vm0 = vcmask 1043456   ;;  %vm373_vm1 = vcmask 64512   ;;  %s1694_s0 = inlined_call_operand.vmem [shape: bf16[512,8], index: 0, kind: input, shape index: {}]   ;;  %s1695_s1 = inlined_call_operand.vmem [shape: bf16[8,128], index: 1, kind: input, shape index: {}]   ;;  %s1696_s2 = inlined_call_operand.vmem [shape: f32[1,128], index: 2, kind: input, shape index: {}]   ;;  %s1697_s3 = inlined_call_operand.hbm [shape: bf16[512,128], index: 3, kind: output, shape index: {}]  }
   0x1   :  { %v212_v0 = vld [vmem:[%s1695_s1] sm:$0xf] }
   0x2   :  { %v472_v1 = vsel %vm470_vm0, %v212_v0, 0  ;;  %v1212_v2 = vld [vmem:[%s1694_s0] sm:$0xff] }
   0x3   :  { %v1220_v3 = vld [vmem:[%s1694_s0 + $0x40] sm:$0xff]  ;;  %481 = vmatpush.bf16.msra.mxu0 %v472_v1  ;;  %1435 = vmatpush.bf16.msra.mxu1 %v472_v1 }
   0x4   :  { %v1228_v4 = vld [vmem:[%s1694_s0 + $0x80] sm:$0xff]  ;;  %1436 = vmatpush.bf16.msra.mxu2 %v472_v1  ;;  %1437 = vmatpush.bf16.msra.mxu3 %v472_v1 }
   0x5   :  { %v1236_v5 = vld [vmem:[%s1694_s0 + $0xc0] sm:$0xff] }
   0x6   :  { %8 = vsyncpa [#allocation4], 0  ;;  %1180 = vmatmul.msk.bf16.vlgmr.msra.gmra.mxu0 %vm373_vm1, %v1212_v2  ;;  %1188 = vmatmul.msk.bf16.vlgmr.msra.gmra.mxu1 %vm373_vm1, %v1220_v3  ;;  %v1213_v6 = vld [vmem:[%s1694_s0 + $0x8] sm:$0xff]  ;;  %v1214_v10 = vld [vmem:[%s1694_s0 + $0x10] sm:$0xff]  ;;  %s1040_s25 = sshll.u32 %s1697_s3, 4  ;;  %s1469_s26 = smov 64   ;;  %s1041_s25 = int_to_ptr.hbm [resolvable:$true] %s1040_s25 }
   0x7   :  { %1196 = vmatmul.msk.bf16.vlgmr.msra.gmra.mxu2 %vm373_vm1, %v1228_v4  ;;  %1204 = vmatmul.msk.bf16.vlgmr.msra.gmra.mxu3 %vm373_vm1, %v1236_v5  ;;  %v1221_v7 = vld [vmem:[%s1694_s0 + $0x48] sm:$0xff]  ;;  %v1222_v11 = vld [vmem:[%s1694_s0 + $0x50] sm:$0xff]  ;;  %v1215_v14 = vld [vmem:[%s1694_s0 + $0x18] sm:$0xff]  ;;  %s1470_s27 = smov 4  }
   0x8   :  { %v1229_v8 = vld [vmem:[%s1694_s0 + $0x88] sm:$0xff]  ;;  %v1230_v12 = vld [vmem:[%s1694_s0 + $0x90] sm:$0xff]  ;;  %v1223_v15 = vld [vmem:[%s1694_s0 + $0x58] sm:$0xff] }
   0x9   :  { %v1237_v9 = vld [vmem:[%s1694_s0 + $0xc8] sm:$0xff]  ;;  %v1238_v13 = vld [vmem:[%s1694_s0 + $0xd0] sm:$0xff]  ;;  %v1231_v16 = vld [vmem:[%s1694_s0 + $0x98] sm:$0xff] }
   0xa   :  { %v1239_v17 = vld [vmem:[%s1694_s0 + $0xd8] sm:$0xff]  ;;  %v1216_v18 = vld [vmem:[%s1694_s0 + $0x20] sm:$0xff]  ;;  %v1217_v22 = vld [vmem:[%s1694_s0 + $0x28] sm:$0xff] }
   0xb   :  { %v1224_v19 = vld [vmem:[%s1694_s0 + $0x60] sm:$0xff]  ;;  %v1225_v23 = vld [vmem:[%s1694_s0 + $0x68] sm:$0xff]  ;;  %v1218_v26 = vld [vmem:[%s1694_s0 + $0x30] sm:$0xff] }
   0xc   :  { %v1232_v20 = vld [vmem:[%s1694_s0 + $0xa0] sm:$0xff]  ;;  %v1233_v24 = vld [vmem:[%s1694_s0 + $0xa8] sm:$0xff]  ;;  %v1226_v27 = vld [vmem:[%s1694_s0 + $0x70] sm:$0xff] }
   0xd   :  { %v1240_v21 = vld [vmem:[%s1694_s0 + $0xe0] sm:$0xff]  ;;  %v1241_v25 = vld [vmem:[%s1694_s0 + $0xe8] sm:$0xff]  ;;  %v1234_v28 = vld [vmem:[%s1694_s0 + $0xb0] sm:$0xff] }
   0xe   :  { %v1242_v29 = vld [vmem:[%s1694_s0 + $0xf0] sm:$0xff]  ;;  %v1219_v30 = vld [vmem:[%s1694_s0 + $0x38] sm:$0xff]  ;;  %v1625_v36 = vld [vmem:[%s1696_s2] ss:$0 sm:$0xff] }
   0xf   :  { %v1227_v31 = vld [vmem:[%s1694_s0 + $0x78] sm:$0xff] }
  0x10   :  { %v1235_v32 = vld [vmem:[%s1694_s0 + $0xb8] sm:$0xff] }
  0x11   :  { %v1243_v33 = vld [vmem:[%s1694_s0 + $0xf8] sm:$0xff]  ;;  %s1468_s0 = smov [#allocation3]  }
  0x12   :  { %s1038_s2 = sshll.u32 %s1468_s0, 4  ;;  %s1039_s2 = int_to_ptr.vmem [resolvable:$true] %s1038_s2 }
  0x16   :  { %1181 = vmatmul.msk.bf16.gmra.mxu0 %vm373_vm1, %v1213_v6  ;;  %1189 = vmatmul.msk.bf16.gmra.mxu1 %vm373_vm1, %v1221_v7 }
  0x17   :  { %1197 = vmatmul.msk.bf16.gmra.mxu2 %vm373_vm1, %v1229_v8  ;;  %1205 = vmatmul.msk.bf16.gmra.mxu3 %vm373_vm1, %v1237_v9 }
  0x26   :  { %1182 = vmatmul.msk.bf16.gmra.mxu0 %vm373_vm1, %v1214_v10  ;;  %1190 = vmatmul.msk.bf16.gmra.mxu1 %vm373_vm1, %v1222_v11 }
  0x27   :  { %1198 = vmatmul.msk.bf16.gmra.mxu2 %vm373_vm1, %v1230_v12  ;;  %1206 = vmatmul.msk.bf16.gmra.mxu3 %vm373_vm1, %v1238_v13 }
  0x36   :  { %1183 = vmatmul.msk.bf16.gmra.mxu0 %vm373_vm1, %v1215_v14  ;;  %1191 = vmatmul.msk.bf16.gmra.mxu1 %vm373_vm1, %v1223_v15 }
  0x37   :  { %1199 = vmatmul.msk.bf16.gmra.mxu2 %vm373_vm1, %v1231_v16  ;;  %1207 = vmatmul.msk.bf16.gmra.mxu3 %vm373_vm1, %v1239_v17 }
  0x46   :  { %1184 = vmatmul.msk.bf16.gmra.mxu0 %vm373_vm1, %v1216_v18  ;;  %1192 = vmatmul.msk.bf16.gmra.mxu1 %vm373_vm1, %v1224_v19 }
  0x47   :  { %1200 = vmatmul.msk.bf16.gmra.mxu2 %vm373_vm1, %v1232_v20  ;;  %1208 = vmatmul.msk.bf16.gmra.mxu3 %vm373_vm1, %v1240_v21 }
  0x56   :  { %1185 = vmatmul.msk.bf16.gmra.mxu0 %vm373_vm1, %v1217_v22  ;;  %1193 = vmatmul.msk.bf16.gmra.mxu1 %vm373_vm1, %v1225_v23 }
  0x57   :  { %1201 = vmatmul.msk.bf16.gmra.mxu2 %vm373_vm1, %v1233_v24  ;;  %1209 = vmatmul.msk.bf16.gmra.mxu3 %vm373_vm1, %v1241_v25 }
  0x66   :  { %1186 = vmatmul.msk.bf16.gmra.mxu0 %vm373_vm1, %v1218_v26  ;;  %1194 = vmatmul.msk.bf16.gmra.mxu1 %vm373_vm1, %v1226_v27 }
  0x67   :  { %1202 = vmatmul.msk.bf16.gmra.mxu2 %vm373_vm1, %v1234_v28  ;;  %1210 = vmatmul.msk.bf16.gmra.mxu3 %vm373_vm1, %v1242_v29 }
  0x76   :  { %1187 = vmatmul.msk.bf16.gmra.mxu0 %vm373_vm1, %v1219_v30  ;;  %1195 = vmatmul.msk.bf16.gmra.mxu1 %vm373_vm1, %v1227_v31 }
  0x77   :  { %1203 = vmatmul.msk.bf16.gmra.mxu2 %vm373_vm1, %v1235_v32  ;;  %1211 = vmatmul.msk.bf16.gmra.mxu3 %vm373_vm1, %v1243_v33 }
  0x83   :  { %v483_v34 = vpop.f32.mrf.mxu0  ;;  %v523_v35 = vpop.f32.mrf.mxu1 }
  0x84   :  { %v842_v41 = vadd.f32 %v1625_v36, %v483_v34  ;;  %v858_v42 = vadd.f32 %v1625_v36, %v523_v35 }
  0x8a   :  { %v563_v37 = vpop.f32.mrf.mxu2  ;;  %v603_v38 = vpop.f32.mrf.mxu3 }
  0x8b   :  { %v485_v39 = vpop.f32.mrf.mxu0  ;;  %v525_v40 = vpop.f32.mrf.mxu1  ;;  %v874_v49 = vadd.f32 %v1625_v36, %v563_v37  ;;  %v890_v50 = vadd.f32 %v1625_v36, %v603_v38 }
  0x8c   :  { %v843_v43 = vadd.f32 %v1625_v36, %v485_v39  ;;  %v859_v44 = vadd.f32 %v1625_v36, %v525_v40 }
  0x8e   :  { %v1247_v45 = vpack.c.bf16 %v843_v43, %v842_v41  ;;  %v1287_v46 = vpack.c.bf16 %v859_v44, %v858_v42 }
  0x90   :  { %1248 = vst [vmem:[#allocation3] sm:$0xff] %v1247_v45  }
  0x91   :  { %1411 = vst [vmem:[#allocation3 + $0x40] sm:$0xff] %v1287_v46  }
  0x92   :  { %v565_v47 = vpop.f32.mrf.mxu2  ;;  %v605_v48 = vpop.f32.mrf.mxu3 }
  0x93   :  { %v875_v51 = vadd.f32 %v1625_v36, %v565_v47  ;;  %v891_v52 = vadd.f32 %v1625_v36, %v605_v48  ;;  %v488_v53 = vpop.f32.mrf.mxu0  ;;  %v528_v54 = vpop.f32.mrf.mxu1 }
  0x94   :  { %v844_v61 = vadd.f32 %v1625_v36, %v488_v53  ;;  %v860_v62 = vadd.f32 %v1625_v36, %v528_v54 }
  0x95   :  { %v1327_v55 = vpack.c.bf16 %v875_v51, %v874_v49  ;;  %v1367_v56 = vpack.c.bf16 %v891_v52, %v890_v50 }
  0x97   :  { %1419 = vst [vmem:[#allocation3 + $0x80] sm:$0xff] %v1327_v55  }
  0x98   :  { %1427 = vst [vmem:[#allocation3 + $0xc0] sm:$0xff] %v1367_v56  }
  0x9a   :  { %v568_v57 = vpop.f32.mrf.mxu2  ;;  %v608_v58 = vpop.f32.mrf.mxu3 }
  0x9b   :  { %v490_v59 = vpop.f32.mrf.mxu0  ;;  %v530_v60 = vpop.f32.mrf.mxu1  ;;  %v876_v5 = vadd.f32 %v1625_v36, %v568_v57  ;;  %v892_v6 = vadd.f32 %v1625_v36, %v608_v58 }
  0x9c   :  { %v845_v63 = vadd.f32 %v1625_v36, %v490_v59  ;;  %v861_v0 = vadd.f32 %v1625_v36, %v530_v60 }
  0x9e   :  { %v1252_v1 = vpack.c.bf16 %v845_v63, %v844_v61  ;;  %v1292_v2 = vpack.c.bf16 %v861_v0, %v860_v62 }
  0xa0   :  { %1404 = vst [vmem:[#allocation3 + $0x8] sm:$0xff] %v1252_v1  }
  0xa1   :  { %1412 = vst [vmem:[#allocation3 + $0x48] sm:$0xff] %v1292_v2  }
  0xa2   :  { %v570_v3 = vpop.f32.mrf.mxu2  ;;  %v610_v4 = vpop.f32.mrf.mxu3 }
  0xa3   :  { %v877_v7 = vadd.f32 %v1625_v36, %v570_v3  ;;  %v893_v8 = vadd.f32 %v1625_v36, %v610_v4  ;;  %v493_v9 = vpop.f32.mrf.mxu0  ;;  %v533_v10 = vpop.f32.mrf.mxu1 }
  0xa4   :  { %v846_v17 = vadd.f32 %v1625_v36, %v493_v9  ;;  %v862_v18 = vadd.f32 %v1625_v36, %v533_v10 }
  0xa5   :  { %v1332_v11 = vpack.c.bf16 %v877_v7, %v876_v5  ;;  %v1372_v12 = vpack.c.bf16 %v893_v8, %v892_v6 }
  0xa7   :  { %1420 = vst [vmem:[#allocation3 + $0x88] sm:$0xff] %v1332_v11  }
  0xa8   :  { %1428 = vst [vmem:[#allocation3 + $0xc8] sm:$0xff] %v1372_v12  }
  0xaa   :  { %v573_v13 = vpop.f32.mrf.mxu2  ;;  %v613_v14 = vpop.f32.mrf.mxu3 }
  0xab   :  { %v495_v15 = vpop.f32.mrf.mxu0  ;;  %v535_v16 = vpop.f32.mrf.mxu1  ;;  %v878_v25 = vadd.f32 %v1625_v36, %v573_v13  ;;  %v894_v26 = vadd.f32 %v1625_v36, %v613_v14 }
  0xac   :  { %v847_v19 = vadd.f32 %v1625_v36, %v495_v15  ;;  %v863_v20 = vadd.f32 %v1625_v36, %v535_v16 }
  0xae   :  { %v1257_v21 = vpack.c.bf16 %v847_v19, %v846_v17  ;;  %v1297_v22 = vpack.c.bf16 %v863_v20, %v862_v18 }
  0xb0   :  { %1405 = vst [vmem:[#allocation3 + $0x10] sm:$0xff] %v1257_v21  }
  0xb1   :  { %1413 = vst [vmem:[#allocation3 + $0x50] sm:$0xff] %v1297_v22  }
  0xb2   :  { %v575_v23 = vpop.f32.mrf.mxu2  ;;  %v615_v24 = vpop.f32.mrf.mxu3 }
  0xb3   :  { %v879_v27 = vadd.f32 %v1625_v36, %v575_v23  ;;  %v895_v28 = vadd.f32 %v1625_v36, %v615_v24  ;;  %v498_v29 = vpop.f32.mrf.mxu0  ;;  %v538_v30 = vpop.f32.mrf.mxu1 }
  0xb4   :  { %v848_v38 = vadd.f32 %v1625_v36, %v498_v29  ;;  %v864_v39 = vadd.f32 %v1625_v36, %v538_v30 }
  0xb5   :  { %v1337_v31 = vpack.c.bf16 %v879_v27, %v878_v25  ;;  %v1377_v32 = vpack.c.bf16 %v895_v28, %v894_v26 }
  0xb7   :  { %1421 = vst [vmem:[#allocation3 + $0x90] sm:$0xff] %v1337_v31  }
  0xb8   :  { %1429 = vst [vmem:[#allocation3 + $0xd0] sm:$0xff] %v1377_v32  }
  0xba   :  { %v578_v33 = vpop.f32.mrf.mxu2  ;;  %v618_v34 = vpop.f32.mrf.mxu3 }
  0xbb   :  { %v500_v35 = vpop.f32.mrf.mxu0  ;;  %v540_v37 = vpop.f32.mrf.mxu1  ;;  %v880_v46 = vadd.f32 %v1625_v36, %v578_v33  ;;  %v896_v47 = vadd.f32 %v1625_v36, %v618_v34 }
  0xbc   :  { %v849_v40 = vadd.f32 %v1625_v36, %v500_v35  ;;  %v865_v41 = vadd.f32 %v1625_v36, %v540_v37 }
  0xbe   :  { %v1262_v42 = vpack.c.bf16 %v849_v40, %v848_v38  ;;  %v1302_v43 = vpack.c.bf16 %v865_v41, %v864_v39 }
  0xc0   :  { %1406 = vst [vmem:[#allocation3 + $0x18] sm:$0xff] %v1262_v42  }
  0xc1   :  { %1414 = vst [vmem:[#allocation3 + $0x58] sm:$0xff] %v1302_v43  }
  0xc2   :  { %v580_v44 = vpop.f32.mrf.mxu2  ;;  %v620_v45 = vpop.f32.mrf.mxu3 }
  0xc3   :  { %v881_v48 = vadd.f32 %v1625_v36, %v580_v44  ;;  %v897_v49 = vadd.f32 %v1625_v36, %v620_v45  ;;  %v503_v50 = vpop.f32.mrf.mxu0  ;;  %v543_v51 = vpop.f32.mrf.mxu1 }
  0xc4   :  { %v850_v58 = vadd.f32 %v1625_v36, %v503_v50  ;;  %v866_v59 = vadd.f32 %v1625_v36, %v543_v51 }
  0xc5   :  { %v1342_v52 = vpack.c.bf16 %v881_v48, %v880_v46  ;;  %v1382_v53 = vpack.c.bf16 %v897_v49, %v896_v47 }
  0xc7   :  { %1422 = vst [vmem:[#allocation3 + $0x98] sm:$0xff] %v1342_v52  }
  0xc8   :  { %1430 = vst [vmem:[#allocation3 + $0xd8] sm:$0xff] %v1382_v53  }
  0xca   :  { %v583_v54 = vpop.f32.mrf.mxu2  ;;  %v623_v55 = vpop.f32.mrf.mxu3 }
  0xcb   :  { %v505_v56 = vpop.f32.mrf.mxu0  ;;  %v545_v57 = vpop.f32.mrf.mxu1  ;;  %v882_v2 = vadd.f32 %v1625_v36, %v583_v54  ;;  %v898_v3 = vadd.f32 %v1625_v36, %v623_v55 }
  0xcc   :  { %v851_v60 = vadd.f32 %v1625_v36, %v505_v56  ;;  %v867_v61 = vadd.f32 %v1625_v36, %v545_v57 }
  0xce   :  { %v1267_v62 = vpack.c.bf16 %v851_v60, %v850_v58  ;;  %v1307_v63 = vpack.c.bf16 %v867_v61, %v866_v59 }
  0xd0   :  { %1407 = vst [vmem:[#allocation3 + $0x20] sm:$0xff] %v1267_v62  }
  0xd1   :  { %1415 = vst [vmem:[#allocation3 + $0x60] sm:$0xff] %v1307_v63  }
  0xd2   :  { %v585_v0 = vpop.f32.mrf.mxu2  ;;  %v625_v1 = vpop.f32.mrf.mxu3 }
  0xd3   :  { %v883_v4 = vadd.f32 %v1625_v36, %v585_v0  ;;  %v899_v5 = vadd.f32 %v1625_v36, %v625_v1  ;;  %v508_v6 = vpop.f32.mrf.mxu0  ;;  %v548_v7 = vpop.f32.mrf.mxu1 }
  0xd4   :  { %v852_v14 = vadd.f32 %v1625_v36, %v508_v6  ;;  %v868_v15 = vadd.f32 %v1625_v36, %v548_v7 }
  0xd5   :  { %v1347_v8 = vpack.c.bf16 %v883_v4, %v882_v2  ;;  %v1387_v9 = vpack.c.bf16 %v899_v5, %v898_v3 }
  0xd7   :  { %1423 = vst [vmem:[#allocation3 + $0xa0] sm:$0xff] %v1347_v8  }
  0xd8   :  { %1431 = vst [vmem:[#allocation3 + $0xe0] sm:$0xff] %v1387_v9  }
  0xda   :  { %v588_v10 = vpop.f32.mrf.mxu2  ;;  %v628_v11 = vpop.f32.mrf.mxu3 }
  0xdb   :  { %v510_v12 = vpop.f32.mrf.mxu0  ;;  %v550_v13 = vpop.f32.mrf.mxu1  ;;  %v884_v22 = vadd.f32 %v1625_v36, %v588_v10  ;;  %v900_v23 = vadd.f32 %v1625_v36, %v628_v11 }
  0xdc   :  { %v853_v16 = vadd.f32 %v1625_v36, %v510_v12  ;;  %v869_v17 = vadd.f32 %v1625_v36, %v550_v13 }
  0xde   :  { %v1272_v18 = vpack.c.bf16 %v853_v16, %v852_v14  ;;  %v1312_v19 = vpack.c.bf16 %v869_v17, %v868_v15 }
  0xe0   :  { %1408 = vst [vmem:[#allocation3 + $0x28] sm:$0xff] %v1272_v18  }
  0xe1   :  { %1416 = vst [vmem:[#allocation3 + $0x68] sm:$0xff] %v1312_v19  }
  0xe2   :  { %v590_v20 = vpop.f32.mrf.mxu2  ;;  %v630_v21 = vpop.f32.mrf.mxu3 }
  0xe3   :  { %v885_v24 = vadd.f32 %v1625_v36, %v590_v20  ;;  %v901_v25 = vadd.f32 %v1625_v36, %v630_v21  ;;  %v513_v26 = vpop.f32.mrf.mxu0  ;;  %v553_v27 = vpop.f32.mrf.mxu1 }
  0xe4   :  { %v854_v34 = vadd.f32 %v1625_v36, %v513_v26  ;;  %v870_v35 = vadd.f32 %v1625_v36, %v553_v27 }
  0xe5   :  { %v1352_v28 = vpack.c.bf16 %v885_v24, %v884_v22  ;;  %v1392_v29 = vpack.c.bf16 %v901_v25, %v900_v23 }
  0xe7   :  { %1424 = vst [vmem:[#allocation3 + $0xa8] sm:$0xff] %v1352_v28  }
  0xe8   :  { %1432 = vst [vmem:[#allocation3 + $0xe8] sm:$0xff] %v1392_v29  }
  0xea   :  { %v593_v30 = vpop.f32.mrf.mxu2  ;;  %v633_v31 = vpop.f32.mrf.mxu3 }
  0xeb   :  { %v515_v32 = vpop.f32.mrf.mxu0  ;;  %v555_v33 = vpop.f32.mrf.mxu1  ;;  %v886_v43 = vadd.f32 %v1625_v36, %v593_v30  ;;  %v902_v44 = vadd.f32 %v1625_v36, %v633_v31 }
  0xec   :  { %v855_v37 = vadd.f32 %v1625_v36, %v515_v32  ;;  %v871_v38 = vadd.f32 %v1625_v36, %v555_v33 }
  0xee   :  { %v1277_v39 = vpack.c.bf16 %v855_v37, %v854_v34  ;;  %v1317_v40 = vpack.c.bf16 %v871_v38, %v870_v35 }
  0xf0   :  { %1409 = vst [vmem:[#allocation3 + $0x30] sm:$0xff] %v1277_v39  }
  0xf1   :  { %1417 = vst [vmem:[#allocation3 + $0x70] sm:$0xff] %v1317_v40  }
  0xf2   :  { %v595_v41 = vpop.f32.mrf.mxu2  ;;  %v635_v42 = vpop.f32.mrf.mxu3 }
  0xf3   :  { %v887_v45 = vadd.f32 %v1625_v36, %v595_v41  ;;  %v903_v46 = vadd.f32 %v1625_v36, %v635_v42  ;;  %v518_v47 = vpop.f32.mrf.mxu0  ;;  %v558_v48 = vpop.f32.mrf.mxu1 }
  0xf4   :  { %v856_v55 = vadd.f32 %v1625_v36, %v518_v47  ;;  %v872_v56 = vadd.f32 %v1625_v36, %v558_v48 }
  0xf5   :  { %v1357_v49 = vpack.c.bf16 %v887_v45, %v886_v43  ;;  %v1397_v50 = vpack.c.bf16 %v903_v46, %v902_v44 }
  0xf7   :  { %1425 = vst [vmem:[#allocation3 + $0xb0] sm:$0xff] %v1357_v49  }
  0xf8   :  { %1433 = vst [vmem:[#allocation3 + $0xf0] sm:$0xff] %v1397_v50  }
  0xfa   :  { %v598_v51 = vpop.f32.mrf.mxu2  ;;  %v638_v52 = vpop.f32.mrf.mxu3 }
  0xfb   :  { %v520_v53 = vpop.f32.mrf.mxu0  ;;  %v560_v54 = vpop.f32.mrf.mxu1  ;;  %v888_v63 = vadd.f32 %v1625_v36, %v598_v51  ;;  %v904_v0 = vadd.f32 %v1625_v36, %v638_v52 }
  0xfc   :  { %v857_v57 = vadd.f32 %v1625_v36, %v520_v53  ;;  %v873_v58 = vadd.f32 %v1625_v36, %v560_v54 }
  0xfe   :  { %v1282_v59 = vpack.c.bf16 %v857_v57, %v856_v55  ;;  %v1322_v60 = vpack.c.bf16 %v873_v58, %v872_v56 }
 0x100   :  { %1410 = vst [vmem:[#allocation3 + $0x38] sm:$0xff] %v1282_v59  }
 0x101   :  { %1418 = vst [vmem:[#allocation3 + $0x78] sm:$0xff] %v1322_v60  }
 0x102   :  { %v600_v61 = vpop.f32.mrf.mxu2  ;;  %v640_v62 = vpop.f32.mrf.mxu3 }
 0x103   :  { %v889_v1 = vadd.f32 %v1625_v36, %v600_v61  ;;  %v905_v2 = vadd.f32 %v1625_v36, %v640_v62 }
 0x105   :  { %v1362_v3 = vpack.c.bf16 %v889_v1, %v888_v63  ;;  %v1402_v4 = vpack.c.bf16 %v905_v2, %v904_v0 }
 0x107   :  { %1426 = vst [vmem:[#allocation3 + $0xb8] sm:$0xff] %v1362_v3  }
 0x108   :  { %1434 = vst [vmem:[#allocation3 + $0xf8] sm:$0xff] %v1402_v4  }
 0x109   :  { %1046 = dma.vmem_to_hbm [thread:$0]  %s1039_s2, 4096, %s1041_s25, [#allocation4], %s1469_s26, %s1469_s26, %s1470_s27  }
 0x10a   :  { %1466 = dma.done.wait [#allocation4], 4096  }
 0x10b   :  { %1467 = vsyncadd [#allocation4], 4294963200 }
 0x10c   :  { %1051 = vsyncpa [#allocation4], 1 }

</bundles_post_ra>
